<compile_context>
chip_gen: v5e
topology: v5e:2x2
jax: 0.10.0
libtpu: 0.0.40
codegen_flags: <defaults>
</compile_context>

<pallas_src>
import math

import jax
import jax.numpy as jnp
from jax.experimental import pallas as pl
from jax.experimental.pallas import tpu as pltpu

_LANE = 128
_SUBLANE = 8


def _scale_kernel(x_ref, s_ref, o_ref):
    # x_ref : (tile_rows, tile_d) input tile
    # s_ref : (_SUBLANE, tile_d) scale block (all sublanes identical)
    # o_ref : (tile_rows, tile_d) output tile
    x = x_ref[...].astype(o_ref.dtype)
    s = s_ref[0:1, :].astype(o_ref.dtype)      # (1, tile_d) -> sublane broadcast
    o_ref[...] = x * s


def scale_forward(x, scale, *, target_tile_bytes=4 * 1024 * 1024,
                  vmem_limit_bytes=32 * 1024 * 1024):
    """y = x * scale, with `scale` of shape (dim,) broadcast on the last axis.

    Matches the PyTorch module's semantics (including dtype promotion).
    """
    orig_shape = x.shape
    dim = int(orig_shape[-1])
    assert scale.shape == (dim,), (scale.shape, dim)

    out_dtype = jnp.promote_types(x.dtype, scale.dtype)

    rows = 1
    for d in orig_shape[:-1]:
        rows *= int(d)

    # ---- lane folding: present a lane-dense (multiple-of-128) last dim -----
    if dim % _LANE != 0:
        k = _LANE // math.gcd(dim, _LANE)          # smallest k: k*dim % 128 == 0
        if k > 1 and rows >= k and rows % k == 0:
            rows_f, dim_f = rows // k, k * dim
            x2d = x.reshape(rows_f, dim_f)
            s_row = jnp.tile(scale, k)             # scale repeated per folded row
        else:
            rows_f, dim_f = rows, dim              # fallback: full (unaligned) dim
            x2d = x.reshape(rows_f, dim_f)
            s_row = scale
    else:
        rows_f, dim_f = rows, dim
        x2d = x.reshape(rows_f, dim_f)
        s_row = scale

    # Sublane-aligned scale block: (8, dim_f), every sublane identical (tiny).
    s_blk = jnp.broadcast_to(s_row.reshape(1, dim_f), (_SUBLANE, dim_f))

    # ---- tile sizing: large HBM-roofline-friendly tiles ---------------------
    in_bytes = jnp.dtype(x.dtype).itemsize
    out_bytes = jnp.dtype(out_dtype).itemsize
    elem_bytes = max(in_bytes, out_bytes)

    # Tile the channel axis too when dim_f is huge (only legal if 128-aligned).
    if dim_f % _LANE == 0:
        max_d = (target_tile_bytes // (_SUBLANE * elem_bytes)) // _LANE * _LANE
        tile_d = min(dim_f, max(_LANE, max_d))
    else:
        tile_d = dim_f                              # must take the full lane extent

    tr = target_tile_bytes // (tile_d * elem_bytes)
    tr = max(_SUBLANE, (tr // _SUBLANE) * _SUBLANE)
    # Small inputs: one exact block (block == full array dims, no OOB at all).
    # Large inputs: multiple-of-8 row tiles; a ragged last block is handled by
    # Pallas' OOB store masking (no host-side pad/slice copies).
    tile_rows = rows_f if tr >= rows_f else tr

    grid = (pl.cdiv(rows_f, tile_rows), pl.cdiv(dim_f, tile_d))

    out2d = pl.pallas_call(
        _scale_kernel,
        out_shape=jax.ShapeDtypeStruct((rows_f, dim_f), out_dtype),
        grid_spec=pltpu.PrefetchScalarGridSpec(
            num_scalar_prefetch=0,
            grid=grid,
            in_specs=[
                pl.BlockSpec((tile_rows, tile_d), lambda i, j: (i, j)),
                pl.BlockSpec((_SUBLANE, tile_d), lambda i, j: (0, j)),
            ],
            out_specs=pl.BlockSpec((tile_rows, tile_d), lambda i, j: (i, j)),
        ),
        compiler_params=pltpu.CompilerParams(
            dimension_semantics=("parallel", "parallel"),
            vmem_limit_bytes=vmem_limit_bytes,
        ),
    )(x2d, s_blk)

    return out2d.reshape(orig_shape)


if __name__ == "__main__":
    key = jax.random.PRNGKey(0)

    # Shapes consistent with rtmcc_head usage: (batch, seq, hidden).
    batch, seq, dim = 2, 8, 32

    # Parameter init matches nn.Parameter(init_value * ones(dim)) with
    # init_value=1.0, then perturbed so the test is non-trivial.
    init_value = 1.0
    scale = init_value * jnp.ones((dim,), dtype=jnp.float32)
    kx, ks = jax.random.split(key)
    scale = scale + 0.1 * jax.random.normal(ks, (dim,), dtype=jnp.float32)
    x = jax.random.normal(kx, (batch, seq, dim), dtype=jnp.float32)

    y = jax.block_until_ready(scale_forward(x, scale))
    y_ref = x * scale
    assert y.shape == x.shape and y.dtype == y_ref.dtype
    assert jnp.allclose(y, y_ref, atol=1e-6, rtol=1e-6)

    # Extra coverage: 128-aligned dim (no lane folding needed).
    k2, k3, k4 = jax.random.split(ks, 3)
    x2 = jax.random.normal(k2, (3, 5, 128), dtype=jnp.float32)
    s2 = jax.random.normal(k3, (128,), dtype=jnp.float32)
    y2 = jax.block_until_ready(scale_forward(x2, s2))
    assert jnp.allclose(y2, x2 * s2, atol=1e-6, rtol=1e-6)

    # Extra coverage: rows not divisible by the fold factor -> full-dim fallback.
    x3 = jax.random.normal(k4, (3, 32), dtype=jnp.float32)
    y3 = jax.block_until_ready(scale_forward(x3, scale))
    assert jnp.allclose(y3, x3 * scale, atol=1e-6, rtol=1e-6)

    print("KERNEL_OK")
</pallas_src>

<mosaic_0001>
module attributes {stable_mosaic.version = 11 : i64} {
  func.func @_scale_kernel(%arg0: i32, %arg1: i32, %arg2: memref<4x128xf32, #tpu.memory_space<vmem>>, %arg3: memref<8x128xf32, #tpu.memory_space<vmem>>, %arg4: memref<4x128xf32, #tpu.memory_space<vmem>>) attributes {dimension_semantics = [#tpu.dimension_semantics<parallel>, #tpu.dimension_semantics<parallel>], iteration_bounds = array<i64: 1, 1>, scalar_prefetch = 0 : i64, scratch_operands = 0 : i64, tpu.core_type = #tpu.core_type<tc>, window_params = [{transform_indices = @transform_0, window_bounds = array<i64: 4, 128>}, {transform_indices = @transform_1, window_bounds = array<i64: 8, 128>}, {transform_indices = @transform_2, window_bounds = array<i64: 4, 128>}]} {
    %c0 = arith.constant 0 : index
    %c0_0 = arith.constant 0 : index
    %0 = vector.load %arg2[%c0, %c0_0] : memref<4x128xf32, #tpu.memory_space<vmem>>, vector<4x128xf32>
    %c0_1 = arith.constant 0 : index
    %c0_2 = arith.constant 0 : index
    %1 = vector.load %arg3[%c0_1, %c0_2] : memref<8x128xf32, #tpu.memory_space<vmem>>, vector<1x128xf32>
    %2 = vector.broadcast %1 : vector<1x128xf32> to vector<4x128xf32>
    %3 = arith.mulf %0, %2 : vector<4x128xf32>
    %c0_3 = arith.constant 0 : index
    %c0_4 = arith.constant 0 : index
    %4 = vector.load %arg4[%c0_3, %c0_4] : memref<4x128xf32, #tpu.memory_space<vmem>>, vector<4x128xf32>
    tpu.vector_store %arg4[%c0_3, %c0_4], %3 {strides = array<i32>} : memref<4x128xf32, #tpu.memory_space<vmem>>, vector<4x128xf32>,
    return
  }
  func.func @transform_0(%arg0: i32, %arg1: i32) -> (i32, i32) {
    %c0_i32 = arith.constant 0 : i32
    return %arg0, %arg1 : i32, i32
  }
  func.func @transform_1(%arg0: i32, %arg1: i32) -> (i32, i32) {
    %c0_i32 = arith.constant 0 : i32
    %c0_i32_0 = arith.constant 0 : i32
    return %c0_i32, %arg1 : i32, i32
  }
  func.func @transform_2(%arg0: i32, %arg1: i32) -> (i32, i32) {
    %c0_i32 = arith.constant 0 : i32
    return %arg0, %arg1 : i32, i32
  }
}

</mosaic_0001>

<bundles_post_ra>
// kernel: tpu_custom_call.1
= control target key start
LH: loop header
LB: loop body
LE: loop exit
PB: predicated region body
PF: predicated region fallthrough
CT: control target
= control target key end

     0   :  { %7 = vsyncpa [#allocation3], 0  ;;  %s172_s0 = inlined_call_operand.hbm [shape: f32[4,128], index: 0, kind: input, shape index: {}]   ;;  %s173_s1 = inlined_call_operand.hbm [shape: f32[8,128], index: 1, kind: input, shape index: {}]   ;;  %s174_s2 = inlined_call_operand.hbm [shape: f32[4,128], index: 2, kind: output, shape index: {}]  }
   0x1   :  { %8 = vsyncpa [#allocation6], 0 }
   0x2   :  { %9 = vsyncpa [#allocation4], 0  ;;  %s15_s11 = sshll.u32 %s172_s0, 4  ;;  %s145_s12 = smov [#allocation2]   ;;  %s16_s11 = int_to_ptr.hbm [resolvable:$true] %s15_s11 }
   0x3   :  { %s17_s13 = sshll.u32 %s145_s12, 4  ;;  %s26_s16 = sshll.u32 %s173_s1, 4  ;;  %s18_s13 = int_to_ptr.vmem [resolvable:$true] %s17_s13  ;;  %s27_s16 = int_to_ptr.hbm [resolvable:$true] %s26_s16 }
   0x4   :  { %20 = dma.hbm_to_vmem [thread:$0]  %s16_s11, 64, %s18_s13, [#allocation3]  }
   0x5   :  { %s146_s17 = smov [#allocation5]  }
   0x6   :  { %s28_s18 = sshll.u32 %s146_s17, 4  ;;  %s29_s18 = int_to_ptr.vmem [resolvable:$true] %s28_s18 }
   0x7   :  { %31 = dma.hbm_to_vmem [thread:$0]  %s27_s16, 128, %s29_s18, [#allocation6]  }
   0x8   :  { %139 = dma.done.wait [#allocation3], 64  }
   0x9   :  { %140 = vsyncadd [#allocation3], 4294967232 }
   0xa   :  { %141 = dma.done.wait [#allocation6], 128  }
   0xb   :  { %142 = vsyncadd [#allocation6], 4294967168  ;;  %s147_s19 = smov [#allocation7]   ;;  %s52_s22 = sshll.u32 %s174_s2, 4  ;;  %v40_v0 = vld [vmem:[#allocation2] sm:$0xf]  ;;  %s53_s22 = int_to_ptr.hbm [resolvable:$true] %s52_s22 }
   0xc   :  { %s50_s0 = sshll.u32 %s147_s19, 4  ;;  %v66_v1 = vld [vmem:[#allocation5] ss:$0 sm:$0xff]  ;;  %s51_s0 = int_to_ptr.vmem [resolvable:$true] %s50_s0 }
   0xd   :  { %v43_v2 = vmul.f32 %v66_v1, %v40_v0 }
   0xf   :  { %44 = vst [vmem:[#allocation7] sm:$0xf] %v43_v2 }
  0x10   :  { %55 = dma.vmem_to_hbm [thread:$0]  %s51_s0, 64, %s53_s22, [#allocation4]  }
  0x11   :  { %143 = dma.done.wait [#allocation4], 64  }
  0x12   :  { %144 = vsyncadd [#allocation4], 4294967232 }
  0x13   :  { %60 = vsyncpa [#allocation3], 1 }
  0x14   :  { %61 = vsyncpa [#allocation6], 1 }
  0x15   :  { %62 = vsyncpa [#allocation4], 1 }

</bundles_post_ra>
